<compile_context>
chip_gen: v6e
topology: v6e:2x2x1
jax: 0.10.0
libtpu: 0.0.40
codegen_flags: <defaults>
</compile_context>

<pallas_src>
import math

import jax
import jax.numpy as jnp
from jax.experimental import pallas as pl
from jax.experimental.pallas import tpu as pltpu


def _packing_factor(c):
    """Minimal g (a power of two) such that g * c is a multiple of 128 lanes."""
    return 128 // math.gcd(c, 128)


def _sublane_multiple(dtype):
    itemsize = jnp.dtype(dtype).itemsize
    return {4: 8, 2: 16, 1: 32}.get(itemsize, 8)


def _vmem_capacity_bytes():
    try:
        cap = getattr(pltpu.get_tpu_info(), "vmem_capacity_bytes", None)
        if cap:
            return int(cap)
    except Exception:
        pass
    return 64 * 1024 * 1024   # conservative fallback (v7x-sized VMEM)


# ---------------------------------------------------------------------------
# Pass 1 (two-pass path): per-column sum / sum-of-squares reduction over rows.
# Grid is (num_cores, tiles_per_core): outer axis "parallel" (engages both v7x
# TensorCores), inner axis "arbitrary" with (1, 1, cols) resident per-core
# partial accumulators. Ragged / duplicate tiles are masked only where needed.
# ---------------------------------------------------------------------------
def _make_stats_kernel(valid_rows, tile_rows, tiles_per_core, need_mask):
    first_ragged = valid_rows // tile_rows   # first logical tile that overruns

    def kernel(x_ref, sum_ref, sumsq_ref):
        p = pl.program_id(0)
        i = pl.program_id(1)
        tile_idx = p * tiles_per_core + i

        @pl.when(i == 0)
        def _():
            sum_ref[...] = jnp.zeros_like(sum_ref)
            sumsq_ref[...] = jnp.zeros_like(sumsq_ref)

        x = x_ref[...].astype(jnp.float32)

        def accumulate(xv):
            sum_ref[...] += jnp.sum(xv, axis=0)[None, None, :]
            sumsq_ref[...] += jnp.sum(xv * xv, axis=0)[None, None, :]

        if need_mask:
            @pl.when(tile_idx < first_ragged)     # hot tiles: no masking overhead
            def _():
                accumulate(x)

            @pl.when(tile_idx >= first_ragged)    # overrunning / duplicated tiles
            def _():
                row = (jax.lax.broadcasted_iota(jnp.int32, x.shape, 0)
                       + tile_idx * tile_rows)
                accumulate(jnp.where(row < valid_rows, x, 0.0))
        else:
            accumulate(x)

    return kernel


# ---------------------------------------------------------------------------
# Pass 2 (two-pass path): elementwise  y = x * scale + shift  (per packed column).
# ---------------------------------------------------------------------------
def _normalize_kernel(x_ref, scale_ref, shift_ref, o_ref):
    x = x_ref[...].astype(jnp.float32)
    o_ref[...] = (x * scale_ref[...] + shift_ref[...]).astype(o_ref.dtype)


# ---------------------------------------------------------------------------
# Fused single-kernel path: whole packed tensor resident in VMEM (grid-less call,
# so single-buffered). Reads x once, computes stats, folds scale/shift, writes y.
# The g lane-groups are combined (and re-broadcast) with log2(g) circular rolls
# on the XLU instead of a (cols x cols) combine matrix.
# ---------------------------------------------------------------------------
def _make_fused_kernel(inv_count, eps, g, c):
    def kernel(x_ref, w_ref, b_ref, o_ref):
        x = x_ref[...].astype(jnp.float32)
        s = jnp.sum(x, axis=0, keepdims=True)
        sq = jnp.sum(x * x, axis=0, keepdims=True)
        step = c
        while step < g * c:                       # log2(g) static XLU rolls
            s = s + pltpu.roll(s, shift=step, axis=1)
            sq = sq + pltpu.roll(sq, shift=step, axis=1)
            step *= 2
        mean = s * inv_count
        var = jnp.maximum(sq * inv_count - mean * mean, 0.0)   # biased batch variance
        scale = w_ref[...] * jax.lax.rsqrt(var + eps)
        offset = b_ref[...] - mean * scale
        o_ref[...] = (x * scale + offset).astype(o_ref.dtype)

    return kernel


def batchnorm2d_forward(x, weight, bias, *, eps=1e-5, max_block_bytes=None,
                        force_two_pass=False):
    """nn.BatchNorm2d training-mode forward on NHWC input (affine, biased batch variance)."""
    # TODO(synk): fuse the list-input elementwise sum into the kernels (one BlockSpec
    # per list element) to save the extra HBM round trip of the summed tensor.
    if isinstance(x, (list, tuple)):
        acc = x[0]
        for xi in x[1:]:
            acc = acc + xi
        x = acc

    n, h, w_sp, c = x.shape
    m = n * h * w_sp
    dtype = x.dtype
    itemsize = jnp.dtype(dtype).itemsize
    w_f32 = weight.astype(jnp.float32)
    b_f32 = bias.astype(jnp.float32)

    # ---- lane packing: re-view [m, c] as [rows, g*c] with g*c % 128 == 0 ----
    g0 = _packing_factor(c)
    if c % 128 == 0 or m < g0:
        g = 1                     # already lane-dense, or too tiny to matter
    else:
        g = g0
    main_m = (m // g) * g         # bulk rows that pack exactly (lane-dense)
    rem = m - main_m              # leftover rows (< g <= 128): tiny JAX tail
    rows, cols = main_m // g, g * c

    x_flat = x.reshape(m, c)
    if rem:
        x_main = x_flat[:main_m].reshape(rows, cols)
        x_tail = x_flat[main_m:]
    else:
        x_main = x_flat.reshape(rows, cols)   # contiguous row-major re-view
        x_tail = None

    # ---- generation-aware VMEM budgets ----
    vmem_cap = _vmem_capacity_bytes()
    big_vmem = vmem_cap >= 96 * 1024 * 1024            # v5e / v6e (128 MiB per core)
    if max_block_bytes is None:
        max_block_bytes = (4 if big_vmem else 2) * 1024 * 1024
    two_pass_vmem_limit = (80 if big_vmem else 40) * 1024 * 1024
    fused_vmem_limit = max(int(0.8 * vmem_cap), 32 * 1024 * 1024)

    # ---- fused single-kernel fast path: 1 read + 1 write of x ----
    f32_bytes = rows * cols * 4
    fused_need = 2 * rows * cols * itemsize + 2 * f32_bytes + 64 * 1024
    fused_ok = (not force_two_pass) and rem == 0 and rows > 0 \
        and fused_need <= int(0.7 * vmem_cap)
    if fused_ok:
        w_cols = jnp.tile(w_f32, g)[None, :]
        b_cols = jnp.tile(b_f32, g)[None, :]
        y2 = pl.pallas_call(
            _make_fused_kernel(1.0 / m, float(eps), g, c),
            out_shape=jax.ShapeDtypeStruct((rows, cols), dtype),
            compiler_params=pltpu.CompilerParams(
                vmem_limit_bytes=fused_vmem_limit),
        )(x_main, w_cols, b_cols)
        return y2.reshape(n, h, w_sp, c)

    # ---- two-pass path: large row tiles, dtype-native sublane alignment ----
    sub = _sublane_multiple(dtype)
    bytes_per_row = max(cols * itemsize, 1)
    tile_rows = min(rows, max(sub, max_block_bytes // bytes_per_row))
    if tile_rows < rows:
        tile_rows = max(sub, (tile_rows // sub) * sub)
    n_tiles = pl.cdiv(rows, tile_rows)

    ncores = 2 if n_tiles >= 2 else 1                  # dual-TC on v7x; harmless elsewhere
    tiles_per_core = pl.cdiv(n_tiles, ncores)
    need_mask = (ncores * tiles_per_core * tile_rows) != rows
    last_block = n_tiles - 1

    # pass 1: per-core partial column sums / sums of squares
    s_part, sq_part = pl.pallas_call(
        _make_stats_kernel(rows, tile_rows, tiles_per_core, need_mask),
        out_shape=(jax.ShapeDtypeStruct((ncores, 1, cols), jnp.float32),
                   jax.ShapeDtypeStruct((ncores, 1, cols), jnp.float32)),
        grid_spec=pltpu.PrefetchScalarGridSpec(
            num_scalar_prefetch=0,
            grid=(ncores, tiles_per_core),
            in_specs=[pl.BlockSpec(
                (tile_rows, cols),
                lambda p, i: (jnp.minimum(p * tiles_per_core + i, last_block), 0))],
            out_specs=[pl.BlockSpec((1, 1, cols), lambda p, i: (p, 0, 0)),
                       pl.BlockSpec((1, 1, cols), lambda p, i: (p, 0, 0))]),
        compiler_params=pltpu.CompilerParams(
            dimension_semantics=("parallel", "arbitrary"),
            vmem_limit_bytes=two_pass_vmem_limit),
    )(x_main)

    # tiny per-channel glue (C scalars): combine cores, lane-groups and the JAX tail
    s_c = s_part.sum(axis=(0, 1)).reshape(g, c).sum(axis=0)
    sq_c = sq_part.sum(axis=(0, 1)).reshape(g, c).sum(axis=0)
    if x_tail is not None:
        xt = x_tail.astype(jnp.float32)
        s_c = s_c + xt.sum(axis=0)
        sq_c = sq_c + (xt * xt).sum(axis=0)
    count = jnp.float32(m)
    mean = s_c / count
    var = jnp.maximum(sq_c / count - mean * mean, 0.0)   # biased; clamp cancellation
    inv_std = jax.lax.rsqrt(var + jnp.float32(eps))
    scale_c = w_f32 * inv_std
    shift_c = b_f32 - mean * scale_c
    scale_cols = jnp.tile(scale_c, g)[None, :]
    shift_cols = jnp.tile(shift_c, g)[None, :]

    # pass 2: elementwise normalization (lane-dense output, fully parallel)
    y_main = pl.pallas_call(
        _normalize_kernel,
        out_shape=jax.ShapeDtypeStruct((rows, cols), dtype),
        grid_spec=pltpu.PrefetchScalarGridSpec(
            num_scalar_prefetch=0,
            grid=(n_tiles,),
            in_specs=[pl.BlockSpec((tile_rows, cols), lambda i: (i, 0)),
                      pl.BlockSpec((1, cols), lambda i: (0, 0)),
                      pl.BlockSpec((1, cols), lambda i: (0, 0))],
            out_specs=pl.BlockSpec((tile_rows, cols), lambda i: (i, 0))),
        compiler_params=pltpu.CompilerParams(
            dimension_semantics=("parallel",),
            vmem_limit_bytes=two_pass_vmem_limit),
    )(x_main, scale_cols, shift_cols)

    if x_tail is not None:
        y_tail = (x_tail.astype(jnp.float32) * scale_c + shift_c).astype(dtype)
        y_flat = jnp.concatenate([y_main.reshape(main_m, c), y_tail], axis=0)
    else:
        y_flat = y_main.reshape(m, c)
    return y_flat.reshape(n, h, w_sp, c)


def _reference_forward(x, weight, bias, eps=1e-5):
    """Pure-JAX reference mirroring nn.BatchNorm2d training-mode forward on NHWC."""
    if isinstance(x, (list, tuple)):
        x = sum(x)
    xf = x.astype(jnp.float32)
    mean = jnp.mean(xf, axis=(0, 1, 2))
    var = jnp.mean((xf - mean) ** 2, axis=(0, 1, 2))   # biased
    y = (xf - mean) * jax.lax.rsqrt(var + eps) * weight + bias
    return y.astype(x.dtype)


if __name__ == "__main__":
    key = jax.random.PRNGKey(0)
    k0, k1, k2, k3 = jax.random.split(key, 4)

    def run_and_check(x, weight, bias, atol=1e-4, rtol=1e-4, **kwargs):
        y = jax.block_until_ready(batchnorm2d_forward(x, weight, bias, **kwargs))
        y_ref = _reference_forward(x, weight, bias)
        assert y.shape == y_ref.shape and y.dtype == y_ref.dtype
        ok = jnp.allclose(y.astype(jnp.float32), y_ref.astype(jnp.float32),
                          atol=atol, rtol=rtol)
        assert ok, "mismatch vs reference"
        return y

    # nn.BatchNorm2d(d_in) parameter init: weight = ones(C), bias = zeros(C)
    C = 4
    weight = jnp.ones((C,), dtype=jnp.float32)
    bias = jnp.zeros((C,), dtype=jnp.float32)

    # main demo shape (NHWC, d_in = C = 4): fused, lane-packed path (g=32, cols=128)
    x = jax.random.normal(k0, (2, 16, 16, C), dtype=jnp.float32) * 2.0 + 0.5
    run_and_check(x, weight, bias)

    # same data through the two-pass path (small blocks -> dual-core reduction grid)
    run_and_check(x, weight, bias, force_two_pass=True, max_block_bytes=4096)

    # ragged last row-tile (rows=10, tile=8): pl.when-gated in-kernel masking
    x3 = jax.random.normal(k1, (5, 8, 8, C), dtype=jnp.float32) - 1.5
    run_and_check(x3, weight, bias, force_two_pass=True, max_block_bytes=4096)

    # m % g != 0: lane-dense bulk + tiny JAX tail (m=162 -> 160 packed rows + 2 tail rows)
    x5 = jax.random.normal(k2, (2, 9, 9, C), dtype=jnp.float32) * 0.7 + 0.2
    run_and_check(x5, weight, bias)

    # tiny tensor (m < packing factor): lane-sparse fused fallback
    x4 = jax.random.normal(k2, (1, 5, 5, C), dtype=jnp.float32) * 0.3
    run_and_check(x4, weight, bias)

    # bf16 input through the two-pass path with bf16-native (16-row) sublane tiles
    xb = (jax.random.normal(k3, (4, 16, 16, C), dtype=jnp.float32) * 1.5 + 0.3
          ).astype(jnp.bfloat16)
    run_and_check(xb, weight, bias, atol=3e-2, rtol=3e-2,
                  force_two_pass=True, max_block_bytes=2048)

    # non-default affine parameters
    w2 = jax.random.normal(k3, (C,), dtype=jnp.float32) * 0.5 + 1.0
    b2 = jax.random.normal(k3, (C,), dtype=jnp.float32) * 0.1
    run_and_check(x, w2, b2)

    # list input (summed elementwise before normalization, as in the module)
    run_and_check([x, x * 0.5], weight, bias)

    print("KERNEL_OK")
</pallas_src>

<mosaic_0001>
module attributes {stable_mosaic.version = 11 : i64} {
  func.func @kernel(%arg0: memref<16x128xf32, #tpu.memory_space<vmem>>, %arg1: memref<1x128xf32, #tpu.memory_space<vmem>>, %arg2: memref<1x128xf32, #tpu.memory_space<vmem>>, %arg3: memref<16x128xf32, #tpu.memory_space<vmem>>) attributes {dimension_semantics = [], scalar_prefetch = 0 : i64, scratch_operands = 0 : i64, tpu.core_type = #tpu.core_type<tc>} {
    %c0 = arith.constant 0 : index
    %c0_0 = arith.constant 0 : index
    %0 = vector.load %arg0[%c0, %c0_0] : memref<16x128xf32, #tpu.memory_space<vmem>>, vector<16x128xf32>
    %cst = arith.constant dense<0.000000e+00> : vector<128xf32>
    %1 = vector.multi_reduction <add>, %0, %cst [0] : vector<16x128xf32> to vector<128xf32>
    %2 = vector.shape_cast %1 : vector<128xf32> to vector<1x128xf32>
    %3 = arith.mulf %0, %0 : vector<16x128xf32>
    %cst_1 = arith.constant dense<0.000000e+00> : vector<128xf32>
    %4 = vector.multi_reduction <add>, %3, %cst_1 [0] : vector<16x128xf32> to vector<128xf32>
    %5 = vector.shape_cast %4 : vector<128xf32> to vector<1x128xf32>
    %c4_i32 = arith.constant 4 : i32
    %6 = tpu.dynamic_rotate %2 by %c4_i32 dim 1 : vector<1x128xf32>, i32 -> vector<1x128xf32>
    %7 = arith.addf %2, %6 : vector<1x128xf32>
    %c4_i32_2 = arith.constant 4 : i32
    %8 = tpu.dynamic_rotate %5 by %c4_i32_2 dim 1 : vector<1x128xf32>, i32 -> vector<1x128xf32>
    %9 = arith.addf %5, %8 : vector<1x128xf32>
    %c8_i32 = arith.constant 8 : i32
    %10 = tpu.dynamic_rotate %7 by %c8_i32 dim 1 : vector<1x128xf32>, i32 -> vector<1x128xf32>
    %11 = arith.addf %7, %10 : vector<1x128xf32>
    %c8_i32_3 = arith.constant 8 : i32
    %12 = tpu.dynamic_rotate %9 by %c8_i32_3 dim 1 : vector<1x128xf32>, i32 -> vector<1x128xf32>
    %13 = arith.addf %9, %12 : vector<1x128xf32>
    %c16_i32 = arith.constant 16 : i32
    %14 = tpu.dynamic_rotate %11 by %c16_i32 dim 1 : vector<1x128xf32>, i32 -> vector<1x128xf32>
    %15 = arith.addf %11, %14 : vector<1x128xf32>
    %c16_i32_4 = arith.constant 16 : i32
    %16 = tpu.dynamic_rotate %13 by %c16_i32_4 dim 1 : vector<1x128xf32>, i32 -> vector<1x128xf32>
    %17 = arith.addf %13, %16 : vector<1x128xf32>
    %c32_i32 = arith.constant 32 : i32
    %18 = tpu.dynamic_rotate %15 by %c32_i32 dim 1 : vector<1x128xf32>, i32 -> vector<1x128xf32>
    %19 = arith.addf %15, %18 : vector<1x128xf32>
    %c32_i32_5 = arith.constant 32 : i32
    %20 = tpu.dynamic_rotate %17 by %c32_i32_5 dim 1 : vector<1x128xf32>, i32 -> vector<1x128xf32>
    %21 = arith.addf %17, %20 : vector<1x128xf32>
    %c64_i32 = arith.constant 64 : i32
    %22 = tpu.dynamic_rotate %19 by %c64_i32 dim 1 : vector<1x128xf32>, i32 -> vector<1x128xf32>
    %23 = arith.addf %19, %22 : vector<1x128xf32>
    %c64_i32_6 = arith.constant 64 : i32
    %24 = tpu.dynamic_rotate %21 by %c64_i32_6 dim 1 : vector<1x128xf32>, i32 -> vector<1x128xf32>
    %25 = arith.addf %21, %24 : vector<1x128xf32>
    %cst_7 = arith.constant 0.001953125 : f32
    %26 = vector.broadcast %cst_7 : f32 to vector<1x128xf32>
    %27 = arith.mulf %23, %26 : vector<1x128xf32>
    %cst_8 = arith.constant 0.001953125 : f32
    %28 = vector.broadcast %cst_8 : f32 to vector<1x128xf32>
    %29 = arith.mulf %25, %28 : vector<1x128xf32>
    %30 = arith.mulf %27, %27 : vector<1x128xf32>
    %31 = arith.subf %29, %30 : vector<1x128xf32>
    %cst_9 = arith.constant 0.000000e+00 : f32
    %32 = vector.broadcast %cst_9 : f32 to vector<1x128xf32>
    %33 = arith.maximumf %31, %32 : vector<1x128xf32>
    %c0_10 = arith.constant 0 : index
    %c0_11 = arith.constant 0 : index
    %34 = vector.load %arg1[%c0_10, %c0_11] : memref<1x128xf32, #tpu.memory_space<vmem>>, vector<1x128xf32>
    %cst_12 = arith.constant 9.99999974E-6 : f32
    %35 = vector.broadcast %cst_12 : f32 to vector<1x128xf32>
    %36 = arith.addf %33, %35 : vector<1x128xf32>
    %37 = math.rsqrt %36 : vector<1x128xf32>
    %38 = arith.mulf %34, %37 : vector<1x128xf32>
    %c0_13 = arith.constant 0 : index
    %c0_14 = arith.constant 0 : index
    %39 = vector.load %arg2[%c0_13, %c0_14] : memref<1x128xf32, #tpu.memory_space<vmem>>, vector<1x128xf32>
    %40 = arith.mulf %27, %38 : vector<1x128xf32>
    %41 = arith.subf %39, %40 : vector<1x128xf32>
    %42 = vector.broadcast %38 : vector<1x128xf32> to vector<16x128xf32>
    %43 = arith.mulf %0, %42 : vector<16x128xf32>
    %44 = vector.broadcast %41 : vector<1x128xf32> to vector<16x128xf32>
    %45 = arith.addf %43, %44 : vector<16x128xf32>
    %c0_15 = arith.constant 0 : index
    %c0_16 = arith.constant 0 : index
    %46 = vector.load %arg3[%c0_15, %c0_16] : memref<16x128xf32, #tpu.memory_space<vmem>>, vector<16x128xf32>
    tpu.vector_store %arg3[%c0_15, %c0_16], %45 {strides = array<i32>} : memref<16x128xf32, #tpu.memory_space<vmem>>, vector<16x128xf32>,
    return
  }
}

</mosaic_0001>

<bundles_post_ra>
// kernel: tpu_custom_call.1
= control target key start
LH: loop header
LB: loop body
LE: loop exit
PB: predicated region body
PF: predicated region fallthrough
CT: control target
= control target key end

     0   :  { %8 = vsyncpa [#allocation3], 0  ;;  %s238_s0 = inlined_call_operand.hbm [shape: f32[16,128], index: 0, kind: input, shape index: {}]   ;;  %s239_s1 = inlined_call_operand.vmem [shape: f32[1,128], index: 1, kind: input, shape index: {}]   ;;  %s240_s2 = inlined_call_operand.vmem [shape: f32[1,128], index: 2, kind: input, shape index: {}]   ;;  %s241_s3 = inlined_call_operand.hbm [shape: f32[16,128], index: 3, kind: output, shape index: {}]  }
   0x1   :  { %9 = vsyncpa [#allocation4], 0  ;;  %s178_s12 = smov [#allocation2]  }
   0x2   :  { %s15_s13 = sshll.u32 %s178_s12, 4  ;;  %s16_s13 = int_to_ptr.vmem [resolvable:$true] %s15_s13 }
   0x3   :  { %s142_s14 = scalar_lea.vmem %s16_s13, 256  ;;  %p147_p1 = scmp.lt.s32.totalorder %s16_s13, %s16_s13 }
   0x4   :  { %p143_p0 = scmp.ne.s32.totalorder %s16_s13, %s142_s14  ;;  %p148_p2 = scmp.lt.s32.totalorder %s142_s14, %s142_s14 }
   0x6   :  { %p149_p3 = por %p148_p2, %p147_p1 }
   0x8   :  { %p150_p4 = pnand %p149_p3, %p143_p0 }
   0xa   :  { %153 = shalt.err (!%p150_p4)
}
   0xb   :  { %s179_s15 = smov 128   ;;  %s180_s16 = smov 8  }
   0xc   :  { %21 = dma.hbm_to_vmem [thread:$0]  %s238_s0, 256, %s16_s13, [#allocation3], %s179_s15, %s179_s15, %s180_s16  }
   0xd   :  { %174 = dma.done.wait [#allocation3], 256  }
   0xe   :  { %175 = vsyncadd [#allocation3], 4294967040  ;;  %v212_v0 = vld [vmem:[#allocation2] sm:$0xff]  ;;  %v214_v1 = vld [vmem:[#allocation2 + $0x8] sm:$0xff]  ;;  %s181_s0 = smov 4   ;;  %s182_s19 = smov 16   ;;  %v90_v44 = vlaneseq }
   0xf   :  { %v31_v2 = vadd.f32 %v214_v1, %v212_v0  ;;  %v38_v3 = vmul.f32 %v212_v0, %v212_v0  ;;  %v39_v4 = vmul.f32 %v214_v1, %v214_v1  ;;  %s183_s20 = smov 32   ;;  %s184_s21 = smov 64   ;;  %v82_v46 = vld [vmem:[%s239_s1] sm:$0x1] }
  0x10   :  { %v91_v45 = vshrl.u32 %v90_v44, 7  ;;  %v86_v50 = vld [vmem:[%s240_s2] sm:$0x1]  ;;  %s185_s26 = smov [#allocation5]  }
  0x11   :  { %v32_v5 = vrot.slane %v31_v2, 4  ;;  %v40_v6 = vadd.f32 %v39_v4, %v38_v3  ;;  %s112_s27 = sshll.u32 %s185_s26, 4  ;;  %s113_s27 = int_to_ptr.vmem [resolvable:$true] %s112_s27 }
  0x12   :  { %v92_v47 = vsub.s32 0, %v91_v45  ;;  %s154_s1 = scalar_lea.vmem %s113_s27, 256  ;;  %p159_p6 = scmp.lt.s32.totalorder %s113_s27, %s113_s27 }
  0x13   :  { %v33_v7 = vadd.f32 %v32_v5, %v31_v2  ;;  %v41_v8 = vrot.slane %v40_v6, 4  ;;  %p155_p5 = scmp.ne.s32.totalorder %s113_s27, %s154_s1  ;;  %p160_p7 = scmp.lt.s32.totalorder %s154_s1, %s154_s1 }
  0x15   :  { %v34_v9 = vrot.slane %v33_v7, 2  ;;  %v42_v10 = vadd.f32 %v41_v8, %v40_v6  ;;  %p161_p8 = por %p160_p7, %p159_p6 }
  0x17   :  { %v35_v11 = vadd.f32 %v34_v9, %v33_v7  ;;  %v43_v12 = vrot.slane %v42_v10, 2  ;;  %p162_p9 = pnand %p161_p8, %p155_p5 }
  0x19   :  { %v36_v13 = vrot.slane %v35_v11, 1  ;;  %v44_v14 = vadd.f32 %v43_v12, %v42_v10 }
  0x1b   :  { %v37_v15 = vadd.f32 %v36_v13, %v35_v11  ;;  %v45_v16 = vrot.slane %v44_v14, 1 }
  0x1d   :  { %47 = vrot.lane.b32.xlu0 %v37_v15, %s181_s0  ;;  %v46_v17 = vadd.f32 %v45_v16, %v44_v14 }
  0x21   :  { %50 = vrot.lane.b32.xlu0 %v46_v17, %s181_s0 }
  0x8f   :  { %v48_v18 = vpop.permute.xlu0 %47 }
  0x90   :  { %v49_v19 = vadd.f32 %v48_v18, %v37_v15 }
  0x92   :  { %53 = vrot.lane.b32.xlu1 %v49_v19, %s180_s16 }
  0x93   :  { %v51_v20 = vpop.permute.xlu0 %50 }
  0x94   :  { %v52_v21 = vadd.f32 %v51_v20, %v46_v17 }
  0x96   :  { %56 = vrot.lane.b32.xlu1 %v52_v21, %s180_s16 }
 0x104   :  { %v54_v22 = vpop.permute.xlu1 %53 }
 0x105   :  { %v55_v23 = vadd.f32 %v54_v22, %v49_v19 }
 0x107   :  { %59 = vrot.lane.b32.xlu0 %v55_v23, %s182_s19 }
 0x108   :  { %v57_v24 = vpop.permute.xlu1 %56 }
 0x109   :  { %v58_v25 = vadd.f32 %v57_v24, %v52_v21 }
 0x10b   :  { %62 = vrot.lane.b32.xlu1 %v58_v25, %s182_s19 }
 0x179   :  { %v60_v26 = vpop.permute.xlu0 %59 }
 0x17a   :  { %v61_v27 = vadd.f32 %v60_v26, %v55_v23 }
 0x17c   :  { %65 = vrot.lane.b32.xlu0 %v61_v27, %s183_s20 }
 0x17d   :  { %v63_v28 = vpop.permute.xlu1 %62 }
 0x17e   :  { %v64_v29 = vadd.f32 %v63_v28, %v58_v25 }
 0x180   :  { %68 = vrot.lane.b32.xlu1 %v64_v29, %s183_s20 }
 0x1ee   :  { %v66_v30 = vpop.permute.xlu0 %65 }
 0x1ef   :  { %v67_v31 = vadd.f32 %v66_v30, %v61_v27 }
 0x1f1   :  { %71 = vrot.lane.b32.xlu0 %v67_v31, %s184_s21 }
 0x1f2   :  { %v69_v32 = vpop.permute.xlu1 %68 }
 0x1f3   :  { %v70_v33 = vadd.f32 %v69_v32, %v64_v29 }
 0x1f5   :  { %74 = vrot.lane.b32.xlu1 %v70_v33, %s184_s21 }
 0x263   :  { %v72_v34 = vpop.permute.xlu0 %71 }
 0x264   :  { %v73_v35 = vadd.f32 %v72_v34, %v67_v31 }
 0x266   :  { %v77_v36 = vmul.f32 0.001953125, %v73_v35 }
 0x267   :  { %v75_v37 = vpop.permute.xlu1 %74 }
 0x268   :  { %v76_v38 = vadd.f32 %v75_v37, %v70_v33  ;;  %v79_v39 = vmul.f32 %v77_v36, %v77_v36 }
 0x26a   :  { %v78_v40 = vmul.f32 0.001953125, %v76_v38 }
 0x26c   :  { %v80_v41 = vsub.f32 %v78_v40, %v79_v39 }
 0x26e   :  { %v81_v42 = vmax.f32 %v80_v41, 0.0 }
 0x270   :  { %v83_v43 = vadd.f32 1e-05, %v81_v42 }
 0x272   :  { %132 = vrsqrt.f32 %v83_v43 }
 0x27f   :  { %v133_v48 = vpop.eup %132 }
 0x280   :  { %v85_v49 = vmul.f32 %v133_v48, %v82_v46 }
 0x282   :  { %v87_v51 = vmul.f32 %v85_v49, %v77_v36  ;;  %v93_v52 = vrot.slane %v85_v49, %v92_v47 }
 0x284   :  { %v88_v53 = vsub.f32 %v86_v50, %v87_v51  ;;  %v95_v54 = vmul.f32 %v93_v52, %v212_v0  ;;  %v96_v55 = vmul.f32 %v93_v52, %v214_v1 }
 0x286   :  { %v101_v56 = vrot.slane %v88_v53, %v92_v47 }
 0x288   :  { %v103_v57 = vadd.f32 %v101_v56, %v95_v54  ;;  %v104_v58 = vadd.f32 %v101_v56, %v96_v55 }
 0x28a   :  { %105 = vst [vmem:[#allocation5] sm:$0xff] %v103_v57  ;;  %106 = vst [vmem:[#allocation5 + $0x8] sm:$0xff] %v104_v58 }
 0x28b   :  { %165 = shalt.err (!%p162_p9)
}
 0x28c   :  { %118 = dma.vmem_to_hbm [thread:$0]  %s113_s27, 256, %s241_s3, [#allocation4], %s179_s15, %s179_s15, %s180_s16  }
 0x28d   :  { %176 = dma.done.wait [#allocation4], 256  }
 0x28e   :  { %177 = vsyncadd [#allocation4], 4294967040 }
 0x28f   :  { %122 = vsyncpa [#allocation3], 1 }
 0x290   :  { %123 = vsyncpa [#allocation4], 1 }

</bundles_post_ra>
